<compile_context>
chip_gen: v7x
topology: tpu7x:2x2x1
jax: 0.10.0
libtpu: 0.0.40
codegen_flags: <defaults>
</compile_context>

<pallas_src>
import functools

import jax
import jax.numpy as jnp
from jax.experimental import pallas as pl
from jax.experimental.pallas import tpu as pltpu


# ----------------------------------------------------------------------------
# Fused path: one grid step per batch element; whole (C, HW) image resident.
# ----------------------------------------------------------------------------
def _arm_fused_kernel(inv_hw, x_ref, w_ref, b_ref, o_ref):
    # x_ref: (C, HW) native dtype. w_ref: (C, C) f32 BN-folded conv weight.
    # b_ref: (C, 1) f32 BN-folded conv bias.
    # Global average pool: accumulate in f32 without an f32 full-tile temp.
    pooled = jnp.sum(x_ref[...], axis=1, keepdims=True,
                     dtype=jnp.float32) * inv_hw                      # (C, 1)
    # 1x1 conv (BN already folded into w/b); negligible FLOPs.
    conv = jnp.dot(w_ref[...], pooled,
                   preferred_element_type=jnp.float32) + b_ref[...]   # (C, 1)
    att = jax.nn.sigmoid(conv)                                        # (C, 1)
    # Broadcast multiply in the native dtype.
    o_ref[...] = x_ref[...] * att.astype(o_ref.dtype)


# ----------------------------------------------------------------------------
# Two-pass (bounded-VMEM) path for images that do not fit VMEM.
# ----------------------------------------------------------------------------
def _arm_pool_kernel(hw, hw_tile, tiles_per_split, x_ref, sum_ref):
    # Per-(batch, split-half) spatial sum over HW tiles, accumulated in the
    # f32 output block (resident across the trailing "arbitrary" axis).
    s = pl.program_id(1)
    t = pl.program_id(2)

    @pl.when(t == 0)
    def _():
        sum_ref[...] = jnp.zeros_like(sum_ref)

    # Global tile index; mask lanes past the end of HW (ragged last tile and
    # the possible overflow step when the split is uneven -> contributes 0).
    g = s * tiles_per_split + t
    start = g * hw_tile
    lane = jax.lax.broadcasted_iota(jnp.int32, x_ref.shape, 1)
    x = x_ref[...]
    x = jnp.where(start + lane < hw, x, jnp.zeros_like(x))
    sum_ref[...] += jnp.sum(x, axis=1, keepdims=True, dtype=jnp.float32)


def _arm_scale_kernel(x_ref, att_ref, o_ref):
    # Lane-dense broadcast multiply, native dtype (att pre-cast in wrapper).
    o_ref[...] = x_ref[...] * att_ref[...]


def _pick_hw_tile(hw, c, itemsize):
    # Size the HW tile by bytes: ~4 MiB for f32, ~2 MiB for narrower dtypes
    # (bf16 widens to f32 vregs on v5e -> keep vreg pressure modest).  Big
    # enough to sit near the HBM roofline and amortize the ~0.35us/step cost,
    # rounded down to a multiple of 128 lanes; no divisor-of-HW requirement.
    target_bytes = (4 << 20) if itemsize >= 4 else (2 << 20)
    lanes = (target_bytes // max(c * itemsize, 1)) // 128 * 128
    lanes = max(lanes, 128)
    hw128 = -(-hw // 128) * 128
    return min(lanes, hw128)


def attention_refinement(x, conv_w, conv_b, bn_gamma, bn_beta,
                         bn_mean, bn_var, eps=1e-5,
                         force_two_pass=False, hw_tile=None):
    N, C, H, W = x.shape
    Cout, Cin = conv_w.shape[0], conv_w.shape[1]
    # expand_as(x) in the PyTorch module requires out_channels == in_channels.
    assert Cin == C and Cout == C

    HW = H * W
    # No padding: full-dim blocks (fused) / cdiv grid + in-kernel mask
    # (two-pass) avoid whole-array pad/slice HBM passes.
    x3 = x.reshape(N, C, HW)

    # Fold eval-mode BatchNorm into the 1x1 conv: BN(W p + b) = W' p + b'.
    inv_std = 1.0 / jnp.sqrt(bn_var.astype(jnp.float32) + eps)
    scale = bn_gamma.astype(jnp.float32) * inv_std                    # (C,)
    w_folded = scale[:, None] * conv_w.reshape(C, C).astype(jnp.float32)
    b_folded = (scale * conv_b.astype(jnp.float32)
                + bn_beta.astype(jnp.float32)
                - scale * bn_mean.astype(jnp.float32)).reshape(C, 1)

    itemsize = x.dtype.itemsize
    try:
        vmem_cap = int(pltpu.get_tpu_info().vmem_capacity_bytes)
    except Exception:
        vmem_cap = 64 << 20  # v7x per-TensorCore capacity (smallest gen).

    # Fused footprint: double-buffered input + single-buffered output block
    # (~3x image) + tiny folded weights + headroom.
    image_bytes = C * HW * itemsize
    fused_bytes = 3 * image_bytes + 2 * (C * C + C) * 4 + (1 << 20)
    use_fused = (not force_two_pass) and fused_bytes <= int(0.75 * vmem_cap)

    if use_fused:
        def run_fused(single_buffer_out):
            if single_buffer_out:
                out_spec = pl.BlockSpec((pl.Squeezed(), C, HW),
                                        lambda n: (n, 0, 0),
                                        pipeline_mode=pl.Buffered(1))
            else:
                out_spec = pl.BlockSpec((pl.Squeezed(), C, HW),
                                        lambda n: (n, 0, 0))
            vmem_limit = min(max(fused_bytes + image_bytes, 32 << 20),
                             vmem_cap)
            return pl.pallas_call(
                functools.partial(_arm_fused_kernel, 1.0 / HW),
                out_shape=jax.ShapeDtypeStruct((N, C, HW), x.dtype),
                grid_spec=pltpu.PrefetchScalarGridSpec(
                    num_scalar_prefetch=0,
                    grid=(N,),
                    in_specs=[
                        pl.BlockSpec((pl.Squeezed(), C, HW),
                                     lambda n: (n, 0, 0)),
                        pl.BlockSpec((C, C), lambda n: (0, 0)),
                        pl.BlockSpec((C, 1), lambda n: (0, 0)),
                    ],
                    out_specs=out_spec,
                ),
                compiler_params=pltpu.CompilerParams(
                    dimension_semantics=("parallel",),
                    vmem_limit_bytes=vmem_limit),
                cost_estimate=pl.CostEstimate(
                    flops=2 * N * C * HW + 2 * N * C * C,
                    transcendentals=N * C,
                    bytes_accessed=2 * N * C * HW * itemsize),
            )(x3, w_folded, b_folded)

        try:
            out = run_fused(True)
        except Exception:
            # Fallback for jax versions without pipeline_mode support.
            out = run_fused(False)
    else:
        if hw_tile is None:
            hw_tile = _pick_hw_tile(HW, C, itemsize)
        assert hw_tile % 128 == 0
        T = pl.cdiv(HW, hw_tile)        # total HW tiles (last may be ragged)
        S = 2 if T >= 2 else 1          # megacore split of the tile range
        Tp = pl.cdiv(T, S)              # tiles per split half
        block_bytes = C * hw_tile * itemsize

        # Pass 1: per-(batch, half) spatial sum, f32, accumulated in the
        # resident output block across the trailing "arbitrary" axis.
        pooled_parts = pl.pallas_call(
            functools.partial(_arm_pool_kernel, HW, hw_tile, Tp),
            out_shape=jax.ShapeDtypeStruct((N, S, C, 1), jnp.float32),
            grid_spec=pltpu.PrefetchScalarGridSpec(
                num_scalar_prefetch=0,
                grid=(N, S, Tp),
                in_specs=[
                    pl.BlockSpec(
                        (pl.Squeezed(), C, hw_tile),
                        # Clamp the block index for the (possible) overflow
                        # step of an uneven split; the kernel masks it to 0.
                        lambda n, s, t: (n, 0,
                                         jnp.minimum(s * Tp + t, T - 1))),
                ],
                out_specs=pl.BlockSpec((pl.Squeezed(), pl.Squeezed(), C, 1),
                                       lambda n, s, t: (n, s, 0, 0)),
            ),
            compiler_params=pltpu.CompilerParams(
                dimension_semantics=("parallel", "parallel", "arbitrary"),
                vmem_limit_bytes=max(4 * block_bytes + (2 << 20), 32 << 20)),
            cost_estimate=pl.CostEstimate(
                flops=N * C * HW,
                transcendentals=0,
                bytes_accessed=N * C * HW * itemsize + N * S * C * 4),
        )(x3)

        # Tiny (N, C) attention math in plain JAX; add the per-half partial
        # sums here.  Pre-cast att to x.dtype so the scale kernel does no
        # per-step casting.
        pooled = jnp.sum(pooled_parts[..., 0], axis=1) * (1.0 / HW)   # (N, C)
        att = jax.nn.sigmoid(pooled @ w_folded.T + b_folded[:, 0])    # (N, C)
        att = att.astype(x.dtype).reshape(N, C, 1)

        # Pass 2: lane-dense broadcast multiply, fully parallel (N, T) grid.
        # Ragged last block needs no mask: partial-block writes are dropped.
        def run_scale(buffers):
            def bs(shape, imap):
                if buffers is None:
                    return pl.BlockSpec(shape, imap)
                return pl.BlockSpec(shape, imap,
                                    pipeline_mode=pl.Buffered(buffers))
            return pl.pallas_call(
                _arm_scale_kernel,
                out_shape=jax.ShapeDtypeStruct((N, C, HW), x.dtype),
                grid_spec=pltpu.PrefetchScalarGridSpec(
                    num_scalar_prefetch=0,
                    grid=(N, T),
                    in_specs=[
                        bs((pl.Squeezed(), C, hw_tile),
                           lambda n, t: (n, 0, t)),
                        pl.BlockSpec((pl.Squeezed(), C, 1),
                                     lambda n, t: (n, 0, 0)),
                    ],
                    out_specs=bs((pl.Squeezed(), C, hw_tile),
                                 lambda n, t: (n, 0, t)),
                ),
                compiler_params=pltpu.CompilerParams(
                    dimension_semantics=("parallel", "parallel"),
                    vmem_limit_bytes=max(8 * block_bytes + (2 << 20),
                                         32 << 20)),
                cost_estimate=pl.CostEstimate(
                    flops=N * C * HW,
                    transcendentals=0,
                    bytes_accessed=(2 * N * C * HW * itemsize
                                    + N * C * itemsize)),
            )(x3, att)

        try:
            out = run_scale(3)   # deeper pipeline hides DMA-issue latency
        except Exception:
            out = run_scale(None)

    return out.reshape(N, C, H, W)


def reference(x, conv_w, conv_b, bn_gamma, bn_beta, bn_mean, bn_var, eps=1e-5):
    # Pure-JAX reference of the PyTorch forward (eval-mode BN).
    pooled = jnp.mean(x, axis=(2, 3))                                 # (N, C)
    conv = pooled @ conv_w.reshape(conv_w.shape[0], -1).T + conv_b    # (N, C)
    bn = (conv - bn_mean) / jnp.sqrt(bn_var + eps) * bn_gamma + bn_beta
    att = jax.nn.sigmoid(bn)[:, :, None, None]                        # (N,C,1,1)
    return x * att


if __name__ == "__main__":
    key = jax.random.PRNGKey(0)

    def run_case(case_key, N, C, H, W):
        kx, kw, kb, kg, kbt, km, kv = jax.random.split(case_key, 7)
        x = jax.random.normal(kx, (N, C, H, W), dtype=jnp.float32)
        # Conv2d(C, C, kernel_size=1): weight (C, C, 1, 1), bias (C,)
        conv_w = jax.random.normal(kw, (C, C, 1, 1), dtype=jnp.float32) * 0.1
        conv_b = jax.random.normal(kb, (C,), dtype=jnp.float32) * 0.1
        # BatchNorm2d(C) inference-mode running stats.
        bn_gamma = 1.0 + 0.1 * jax.random.normal(kg, (C,), dtype=jnp.float32)
        bn_beta = 0.1 * jax.random.normal(kbt, (C,), dtype=jnp.float32)
        bn_mean = 0.1 * jax.random.normal(km, (C,), dtype=jnp.float32)
        bn_var = 0.5 + jnp.abs(jax.random.normal(kv, (C,), dtype=jnp.float32))

        args = (x, conv_w, conv_b, bn_gamma, bn_beta, bn_mean, bn_var)
        ref = reference(*args)

        # Fused (VMEM-resident, single HBM read) path.
        out_fused = jax.block_until_ready(attention_refinement(*args))
        assert out_fused.shape == (N, C, H, W)
        assert jnp.allclose(out_fused, ref, rtol=1e-5, atol=1e-5)

        # Bounded-VMEM two-pass fallback, forced with hw_tile=128 so the
        # cross-tile accumulation / split / ragged-tile masking is exercised.
        out_tiled = jax.block_until_ready(
            attention_refinement(*args, force_two_pass=True, hw_tile=128))
        assert jnp.allclose(out_tiled, ref, rtol=1e-5, atol=1e-5)

    k1, k2 = jax.random.split(key)
    run_case(k1, 2, 4, 16, 16)   # HW = 256 (lane-aligned)
    run_case(k2, 2, 4, 13, 13)   # HW = 169 (ragged tail: masked pool tile)
    print("KERNEL_OK")
</pallas_src>

<mosaic_0001>
module attributes {stable_mosaic.version = 11 : i64} {
  func.func @_arm_fused_kernel(%arg0: i32, %arg1: memref<1x4x256xf32, #tpu.memory_space<vmem>>, %arg2: memref<4x4xf32, #tpu.memory_space<vmem>>, %arg3: memref<4x1xf32, #tpu.memory_space<vmem>>, %arg4: memref<1x4x256xf32, #tpu.memory_space<vmem>>) attributes {dimension_semantics = [#tpu.dimension_semantics<parallel>], iteration_bounds = array<i64: 2>, scalar_prefetch = 0 : i64, scratch_operands = 0 : i64, tpu.core_type = #tpu.core_type<tc>, window_params = [{transform_indices = @transform_0, window_bounds = array<i64: 1, 4, 256>}, {pipeline_mode = #tpu.pipeline_mode<synchronous>, transform_indices = @transform_1, window_bounds = array<i64: 4, 4>}, {pipeline_mode = #tpu.pipeline_mode<synchronous>, transform_indices = @transform_2, window_bounds = array<i64: 4, 1>}, {pipeline_mode = #tpu.pipeline_mode<synchronous>, transform_indices = @transform_3, window_bounds = array<i64: 1, 4, 256>}]} {
    %c0 = arith.constant 0 : index
    %c0_0 = arith.constant 0 : index
    %c0_1 = arith.constant 0 : index
    %0 = vector.load %arg1[%c0, %c0_0, %c0_1] : memref<1x4x256xf32, #tpu.memory_space<vmem>>, vector<1x4x256xf32>
    %1 = vector.shape_cast %0 : vector<1x4x256xf32> to vector<4x256xf32>
    %cst = arith.constant dense<0.000000e+00> : vector<4xf32>
    %2 = vector.multi_reduction <add>, %1, %cst [1] : vector<4x256xf32> to vector<4xf32>
    %3 = vector.shape_cast %2 : vector<4xf32> to vector<4x1xf32>
    %cst_2 = arith.constant 3.906250e-03 : f32
    %4 = vector.broadcast %cst_2 : f32 to vector<4x1xf32>
    %5 = arith.mulf %3, %4 : vector<4x1xf32>
    %c0_3 = arith.constant 0 : index
    %c0_4 = arith.constant 0 : index
    %6 = vector.load %arg2[%c0_3, %c0_4] : memref<4x4xf32, #tpu.memory_space<vmem>>, vector<4x4xf32>
    %cst_5 = arith.constant dense<0.000000e+00> : vector<4x1xf32>
    %7 = tpu.matmul %6, %5, %cst_5 {dimension_numbers = #tpu.dot_dimension_numbers<[1], [0], [0], [1], [0, 0, 1, 1], [], []>} : vector<4x4xf32>, vector<4x1xf32>, vector<4x1xf32> -> vector<4x1xf32>
    %c0_6 = arith.constant 0 : index
    %c0_7 = arith.constant 0 : index
    %8 = vector.load %arg3[%c0_6, %c0_7] : memref<4x1xf32, #tpu.memory_space<vmem>>, vector<4x1xf32>
    %9 = arith.addf %7, %8 : vector<4x1xf32>
    %10 = arith.negf %9 : vector<4x1xf32>
    %11 = math.exp %10 : vector<4x1xf32>
    %cst_8 = arith.constant 1.000000e+00 : f32
    %12 = vector.broadcast %cst_8 : f32 to vector<4x1xf32>
    %13 = arith.addf %12, %11 : vector<4x1xf32>
    %14 = arith.divf %12, %13 : vector<4x1xf32>
    %c0_9 = arith.constant 0 : index
    %c0_10 = arith.constant 0 : index
    %c0_11 = arith.constant 0 : index
    %15 = vector.load %arg1[%c0_9, %c0_10, %c0_11] : memref<1x4x256xf32, #tpu.memory_space<vmem>>, vector<1x4x256xf32>
    %16 = vector.shape_cast %15 : vector<1x4x256xf32> to vector<4x256xf32>
    %17 = vector.broadcast %14 : vector<4x1xf32> to vector<4x256xf32>
    %18 = arith.mulf %16, %17 : vector<4x256xf32>
    %c0_12 = arith.constant 0 : index
    %c0_13 = arith.constant 0 : index
    %c0_14 = arith.constant 0 : index
    %19 = vector.load %arg4[%c0_12, %c0_13, %c0_14] : memref<1x4x256xf32, #tpu.memory_space<vmem>>, vector<1x4x256xf32>
    %20 = vector.shape_cast %19 : vector<1x4x256xf32> to vector<4x256xf32>
    %21 = vector.shape_cast %18 : vector<4x256xf32> to vector<1x4x256xf32>
    tpu.vector_store %arg4[%c0_12, %c0_13, %c0_14], %21 {strides = array<i32>} : memref<1x4x256xf32, #tpu.memory_space<vmem>>, vector<1x4x256xf32>,
    return
  }
  func.func @transform_0(%arg0: i32) -> (i32, i32, i32) {
    %c0_i32 = arith.constant 0 : i32
    %c0_i32_0 = arith.constant 0 : i32
    %c0_i32_1 = arith.constant 0 : i32
    return %arg0, %c0_i32, %c0_i32_0 : i32, i32, i32
  }
  func.func @transform_1(%arg0: i32) -> (i32, i32) {
    %c0_i32 = arith.constant 0 : i32
    %c0_i32_0 = arith.constant 0 : i32
    %c0_i32_1 = arith.constant 0 : i32
    return %c0_i32, %c0_i32_0 : i32, i32
  }
  func.func @transform_2(%arg0: i32) -> (i32, i32) {
    %c0_i32 = arith.constant 0 : i32
    %c0_i32_0 = arith.constant 0 : i32
    %c0_i32_1 = arith.constant 0 : i32
    return %c0_i32, %c0_i32_0 : i32, i32
  }
  func.func @transform_3(%arg0: i32) -> (i32, i32, i32) {
    %c0_i32 = arith.constant 0 : i32
    %c0_i32_0 = arith.constant 0 : i32
    %c0_i32_1 = arith.constant 0 : i32
    return %arg0, %c0_i32, %c0_i32_0 : i32, i32, i32
  }
}

module attributes {stable_mosaic.version = 11 : i64} {
  func.func @_arm_fused_kernel(%arg0: i32, %arg1: memref<1x4x256xf32, #tpu.memory_space<vmem>>, %arg2: memref<4x4xf32, #tpu.memory_space<vmem>>, %arg3: memref<4x1xf32, #tpu.memory_space<vmem>>, %arg4: memref<1x4x256xf32, #tpu.memory_space<vmem>>) attributes {dimension_semantics = [#tpu.dimension_semantics<parallel>], iteration_bounds = array<i64: 2>, scalar_prefetch = 0 : i64, scratch_operands = 0 : i64, tpu.core_type = #tpu.core_type<tc>, window_params = [{transform_indices = @transform_0, window_bounds = array<i64: 1, 4, 256>}, {pipeline_mode = #tpu.pipeline_mode<synchronous>, transform_indices = @transform_1, window_bounds = array<i64: 4, 4>}, {pipeline_mode = #tpu.pipeline_mode<synchronous>, transform_indices = @transform_2, window_bounds = array<i64: 4, 1>}, {transform_indices = @transform_3, window_bounds = array<i64: 1, 4, 256>}]} {
    %c0 = arith.constant 0 : index
    %c0_0 = arith.constant 0 : index
    %c0_1 = arith.constant 0 : index
    %0 = vector.load %arg1[%c0, %c0_0, %c0_1] : memref<1x4x256xf32, #tpu.memory_space<vmem>>, vector<1x4x256xf32>
    %1 = vector.shape_cast %0 : vector<1x4x256xf32> to vector<4x256xf32>
    %cst = arith.constant dense<0.000000e+00> : vector<4xf32>
    %2 = vector.multi_reduction <add>, %1, %cst [1] : vector<4x256xf32> to vector<4xf32>
    %3 = vector.shape_cast %2 : vector<4xf32> to vector<4x1xf32>
    %cst_2 = arith.constant 3.906250e-03 : f32
    %4 = vector.broadcast %cst_2 : f32 to vector<4x1xf32>
    %5 = arith.mulf %3, %4 : vector<4x1xf32>
    %c0_3 = arith.constant 0 : index
    %c0_4 = arith.constant 0 : index
    %6 = vector.load %arg2[%c0_3, %c0_4] : memref<4x4xf32, #tpu.memory_space<vmem>>, vector<4x4xf32>
    %cst_5 = arith.constant dense<0.000000e+00> : vector<4x1xf32>
    %7 = tpu.matmul %6, %5, %cst_5 {dimension_numbers = #tpu.dot_dimension_numbers<[1], [0], [0], [1], [0, 0, 1, 1], [], []>} : vector<4x4xf32>, vector<4x1xf32>, vector<4x1xf32> -> vector<4x1xf32>
    %c0_6 = arith.constant 0 : index
    %c0_7 = arith.constant 0 : index
    %8 = vector.load %arg3[%c0_6, %c0_7] : memref<4x1xf32, #tpu.memory_space<vmem>>, vector<4x1xf32>
    %9 = arith.addf %7, %8 : vector<4x1xf32>
    %10 = arith.negf %9 : vector<4x1xf32>
    %11 = math.exp %10 : vector<4x1xf32>
    %cst_8 = arith.constant 1.000000e+00 : f32
    %12 = vector.broadcast %cst_8 : f32 to vector<4x1xf32>
    %13 = arith.addf %12, %11 : vector<4x1xf32>
    %14 = arith.divf %12, %13 : vector<4x1xf32>
    %c0_9 = arith.constant 0 : index
    %c0_10 = arith.constant 0 : index
    %c0_11 = arith.constant 0 : index
    %15 = vector.load %arg1[%c0_9, %c0_10, %c0_11] : memref<1x4x256xf32, #tpu.memory_space<vmem>>, vector<1x4x256xf32>
    %16 = vector.shape_cast %15 : vector<1x4x256xf32> to vector<4x256xf32>
    %17 = vector.broadcast %14 : vector<4x1xf32> to vector<4x256xf32>
    %18 = arith.mulf %16, %17 : vector<4x256xf32>
    %c0_12 = arith.constant 0 : index
    %c0_13 = arith.constant 0 : index
    %c0_14 = arith.constant 0 : index
    %19 = vector.load %arg4[%c0_12, %c0_13, %c0_14] : memref<1x4x256xf32, #tpu.memory_space<vmem>>, vector<1x4x256xf32>
    %20 = vector.shape_cast %19 : vector<1x4x256xf32> to vector<4x256xf32>
    %21 = vector.shape_cast %18 : vector<4x256xf32> to vector<1x4x256xf32>
    tpu.vector_store %arg4[%c0_12, %c0_13, %c0_14], %21 {strides = array<i32>} : memref<1x4x256xf32, #tpu.memory_space<vmem>>, vector<1x4x256xf32>,
    return
  }
  func.func @transform_0(%arg0: i32) -> (i32, i32, i32) {
    %c0_i32 = arith.constant 0 : i32
    %c0_i32_0 = arith.constant 0 : i32
    %c0_i32_1 = arith.constant 0 : i32
    return %arg0, %c0_i32, %c0_i32_0 : i32, i32, i32
  }
  func.func @transform_1(%arg0: i32) -> (i32, i32) {
    %c0_i32 = arith.constant 0 : i32
    %c0_i32_0 = arith.constant 0 : i32
    %c0_i32_1 = arith.constant 0 : i32
    return %c0_i32, %c0_i32_0 : i32, i32
  }
  func.func @transform_2(%arg0: i32) -> (i32, i32) {
    %c0_i32 = arith.constant 0 : i32
    %c0_i32_0 = arith.constant 0 : i32
    %c0_i32_1 = arith.constant 0 : i32
    return %c0_i32, %c0_i32_0 : i32, i32
  }
  func.func @transform_3(%arg0: i32) -> (i32, i32, i32) {
    %c0_i32 = arith.constant 0 : i32
    %c0_i32_0 = arith.constant 0 : i32
    %c0_i32_1 = arith.constant 0 : i32
    return %arg0, %c0_i32, %c0_i32_0 : i32, i32, i32
  }
}

</mosaic_0001>

<bundles_post_ra>
// kernel: tpu_custom_call.1
= control target key start
LH: loop header
LB: loop body
LE: loop exit
PB: predicated region body
PF: predicated region fallthrough
CT: control target
= control target key end

     0   :  { %8 = vsyncpa [#allocation3], 0  ;;  %s691_s0 = inlined_call_operand.hbm [shape: f32[2,4,256], index: 0, kind: input, shape index: {}]   ;;  %s692_s1 = inlined_call_operand.vmem [shape: f32[4,4], index: 1, kind: input, shape index: {}]   ;;  %s693_s2 = inlined_call_operand.vmem [shape: f32[4,1], index: 2, kind: input, shape index: {}]   ;;  %s694_s3 = inlined_call_operand.hbm [shape: f32[2,4,256], index: 3, kind: output, shape index: {}]  }
   0x1   :  { %10 = vsyncpa [#allocation3 + $0x1], 0 }
   0x2   :  { %11 = vsyncpa [#allocation4], 0  ;;  %s552_s12 = smov 0   ;;  %s554_s13 = smov 0  }
   0x3   :  { %s556_s14 = smov 0   ;;  %s558_s15 = smov 0  }
   0x4 LB: > { %s571_s16 = sadd.s32 4294967295, %s524_s15   ;;  %s574_s17 = sadd.s32 1, %s524_s15   ;;  %s524_s15 = sphi %s558_s15, %s706_s15   ;;  %s520_s14 = sphi %s556_s14, %s705_s14   ;;  %s516_s13 = sphi %s554_s13, %s704_s13   ;;  %s512_s12 = sphi %s552_s12, %s703_s12  }
   0x5   : > { %s21_s18 = ssub.s32 %s524_s15, %s574_s17  ;;  %s24_s19 = sadd.s32 1, %s520_s14 }
   0x6   : > { %p22_p0 = scmp.eq.s32.totalorder %s21_s18, 0  ;;  %p31_p1 = scmp.ne.s32.totalorder %s520_s14, %s516_s13 }
   0x7   : > { %p32_p2 = scmp.eq.s32.totalorder %s524_s15, 0  ;;  %p37_p3 = scmp.ne.s32.totalorder %s516_s13, %s512_s12 }
   0x8   : > { %s584_s20 = scalar_select %p22_p0, %s520_s14, %s24_s19  }
   0x9   : > { %p586_p4 = por %p32_p2, %p31_p1  ;;  %p38_p5 = scmp.eq.s32.totalorder %s571_s16, 0 }
   0xa   : > { %p103_p6 = scmp.eq.s32.totalorder %s571_s16, 1  ;;  %p384_p8 = scmp.lt.s32.totalorder %s524_s15, 2 }
   0xb   : > { %p592_p7 = por %p38_p5, %p37_p3  ;;  %s135_s24 = sand.u32 1, %s520_s14  }
   0xc   : > { %p597_p9 = por %p103_p6, %p31_p1  ;;  %s355_s25 = sshll.u32 %s135_s24, 3 }
   0xd   : > { %s367_s26 = sshll.u32 %s524_s15, 7  ;;  %s139_s30 = scalar_lea.vmem [#allocation2], %s355_s25 }
   0xe   : > { %s698_s23 = scalar_select %p597_p9, 1, 0 }
   0xf   : > { %s606_s29 = scalar_lea.hbm %s691_s0, %s367_s26  ;;  %s147_s4 = sshll.u32 %s139_s30, 4  ;;  %s608_s4 = int_to_ptr.vmem [resolvable:$true] %s147_s4 }
  0x10   : > { %p612_p10 = pnand %p384_p8, %p586_p4  ;;  %s136_s6 = scalar_lea.sflag [#allocation3], %s135_s24 }
  0x11   : > { %s428_s7 = scalar_lea.hbm %s606_s29, 128  ;;  %s433_s10 = scalar_lea.hbm %s691_s0, 256 }
  0x12   : > { %p429_p13 = scmp.ne.s32.totalorder %s606_s29, %s428_s7  ;;  %p430_p0 = pneg %p612_p10 }
  0x13   : > { %p434_p3 = scmp.lt.u32.totalorder %s606_s29, %s691_s0  ;;  %p435_p4 = scmp.lt.u32.totalorder %s433_s10, %s428_s7 }
  0x14   : > { %p431_p1 = pnand %p430_p0, %p429_p13  ;;  %p437_p6 = scmp.lt.u32.totalorder %s428_s7, %s606_s29 }
  0x15   : > { %p436_p5 = por %p435_p4, %p434_p3 }
  0x16   : > { %p432_p2 = pneg %p431_p1 }
  0x17   : > { %p438_p8 = por %p437_p6, %p436_p5 }
  0x19   : > { %p439_p11 = pnand %p438_p8, %p432_p2 }
  0x1b   : > { %442 = shalt.err (!%p439_p11)
}
  0x1c   : > { %s443_s18 = scalar_lea.vmem %s608_s4, 128  ;;  %s526_s19 = smov [#allocation2]  }
  0x1d   : > { %p444_p13 = scmp.ne.s32.totalorder %s608_s4, %s443_s18  ;;  %s448_s21 = sshll.u32 %s526_s19, 4  ;;  %s449_s21 = int_to_ptr.vmem [resolvable:$false] %s448_s21 }
  0x1e   : > { %s450_s24 = scalar_lea.vmem %s449_s21, 256  ;;  %p451_p9 = scmp.lt.s32.totalorder %s608_s4, %s449_s21 }
  0x1f   : > { %p446_p1 = pnand %p444_p13, %p430_p0  ;;  %p452_p3 = scmp.lt.s32.totalorder %s450_s24, %s443_s18 }
  0x21   : > { %p447_p12 = pneg %p446_p1  ;;  %p453_p4 = por %p452_p3, %p451_p9 }
  0x23   : > { %p454_p5 = pnand %p453_p4, %p447_p12 }
  0x25   : > { %457 = shalt.err (!%p454_p5)
}
  0x26   : > { %383 = dma.hbm_to_vmem [thread:$0]  (!%p612_p10), %s606_s29, 128, %s608_s4, %s136_s6  }
  0x27   : > { %p700_p11 = scmp.lt.s32.totalorder %s524_s15, 3  ;;  %p701_p2 = scmp.ge.s32.totalorder %s524_s15, 1 }
  0x29   : > { %p153_p0 = pnand %p701_p2, %p700_p11 }
  0x2a   : > { %s158_s25 = sand.u32 (!%p153_p0), 1, %s516_s13  }
  0x2b   : > { %156 = sbr.rel (%p153_p0) target bundleno = 590 (0x24e), region = 32  ;;  %s359_s26 = sshll.u32 (!%p153_p0), %s158_s25, 3 }
  0x2c   : > { %s159_s27 = scalar_lea.sflag (!%p153_p0), [#allocation3], %s158_s25  ;;  %s162_s28 = scalar_lea.vmem (!%p153_p0), [#allocation2], %s359_s26 }
  0x32   : > { %503 = dma.done.wait (%p592_p7), %s159_s27, 128  }
  0x33   : > { %505 = vsyncadd (%p592_p7), %s159_s27, 4294967168  ;;  %vm184_vm0 = vcmask 1043456   ;;  %v180_v0 = vld [vmem:[%s162_s28] sm:$0xff]  ;;  %v527_v5 = vmov 0.0   ;;  %vm528_vm1 = vmmov 0   ;;  %vm193_vm2 = vcmask 31744  }
  0x34   : > { %v182_v1 = vcombine.high %v180_v0, %v180_v0  ;;  %v185_v2 = vsel %vm184_vm0, %v180_v0, 0.0  ;;  %371 = vmatprep.subr.mxu0 %v527_v5  ;;  %373 = vmatprep.mubr.msk.f32.mxu0 %vm528_vm1, %v527_v5  ;;  %v191_v8 = vld [vmem:[%s692_s1] sm:$0xf]  ;;  %v529_v9 = vmov 0   ;;  %v530_v18 = vmov 839922192  }
  0x35   : > { %422 = vset.pattern.permute.xlu0 %v529_v9  ;;  %v192_v10 = vld [vmem:[%s693_s2] sm:$0xf]  ;;  %v281_v19 = vunpack.c.l.s4 %v530_v18  ;;  %v283_v20 = vlaneseq  ;;  %s368_s4 = sshll.u32 %s571_s16, 7  ;;  %s531_s5 = smov [#allocation5]  }
  0x36   : > { %v186_v3 = vsel %vm184_vm0, %v182_v1, 0.0  ;;  %s300_s6 = sshll.u32 %s531_s5, 4  ;;  %s298_s9 = scalar_lea.hbm %s694_s3, %s368_s4  ;;  %s301_s6 = int_to_ptr.vmem [resolvable:$true] %s300_s6 }
  0x37   : > { %v187_v4 = vadd.f32 %v186_v3, %v185_v2  ;;  %v282_v21 = vunpack.c.0.s8 %v281_v19  ;;  %v284_v22 = vshrl.u32 %v283_v20, 7  ;;  %s458_s10 = scalar_lea.vmem %s301_s6, 128  ;;  %p702_p9 = scmp.ne.s32.totalorder %s698_s23, 0 }
  0x38   : > { %p459_p7 = scmp.ne.s32.totalorder %s301_s6, %s458_s10  ;;  %p465_p6 = scmp.lt.s32.totalorder %s301_s6, %s301_s6 }
  0x39   : > { %188 = vadd.xlane.f32.xlu0 %v187_v4  ;;  %v285_v23 = vsub.s32 %v282_v21, %v284_v22  ;;  %p466_p8 = scmp.lt.s32.totalorder %s458_s10, %s458_s10 }
  0x3a   : > { %p460_p10 = pnand %p459_p7, %p702_p9 }
  0x3b   : > { %p467_p13 = por %p466_p8, %p465_p6 }
  0x3c   : > { %p461_p12 = pneg %p460_p10 }
  0x3e   : > { %p468_p1 = pnand %p467_p13, %p461_p12 }
  0xc6   : > { %v189_v6 = vpop.xlane.xlu0 %188 }
  0xc7   : > { %v190_v7 = vmul.f32 0.00390625, %v189_v6 }
  0xc9   : > { %372 = vmatpush3.msk.msra.mxu0 %vm184_vm0, %v190_v7 }
  0xca   : > { %374 = vmatmul.mubr.msk.f32.vlgmr.msra.gmra.mrb[0].mxu0 %vm193_vm2, %v191_v8 }
 0x19d   : > { %v266_v11 = vpop.f32.mrb[0].mxu0 }
 0x19e   : > { %v267_v12 = vadd.f32 %v266_v11, %v192_v10  ;;  %v375_v13 = vpop.f32.mrb[1].mxu0 }
 0x1a0   : > { %v362_v14 = vmul.f32 -1.442695, %v267_v12 }
 0x1a2   : > { %424 = vpow2.f32 %v362_v14 }
 0x1ac   : > { %v425_v15 = vpop.eup %424 }
 0x1ad   : > { %v273_v16 = vadd.f32 1.0, %v425_v15 }
 0x1af   : > { %426 = vrcp.f32 %v273_v16 }
 0x1b9   : > { %v427_v17 = vpop.eup %426 }
 0x1ba   : > { %278 = vperm.xlu0 %422, %v427_v17  }
 0x239   : > { %v279_v24 = vpop.permute.xlu0 %278 }
 0x23a   : > { %v286_v25 = vrot.slane %v279_v24, %v285_v23 }
 0x23c   : > { %v288_v26 = vmul.f32 %v286_v25, %v180_v0 }
 0x23e   : > { %289 = vst [vmem:[#allocation5] sm:$0xff] %v288_v26 }
 0x23f   : > { %471 = shalt.err (!%p468_p1)
}
 0x240   : > { %s472_s16 = scalar_lea.hbm %s298_s9, 128  ;;  %s476_s18 = scalar_lea.hbm %s694_s3, 256 }
 0x241   : > { %p473_p3 = scmp.ne.s32.totalorder %s298_s9, %s472_s16  ;;  %p477_p11 = scmp.lt.u32.totalorder %s298_s9, %s694_s3 }
 0x242   : > { %p478_p2 = scmp.lt.u32.totalorder %s476_s18, %s472_s16  ;;  %p480_p7 = scmp.lt.u32.totalorder %s472_s16, %s298_s9 }
 0x243   : > { %p474_p4 = pnand %p473_p3, %p702_p9 }
 0x244   : > { %p479_p0 = por %p478_p2, %p477_p11 }
 0x245   : > { %p475_p5 = pneg %p474_p4 }
 0x246   : > { %p481_p10 = por %p480_p7, %p479_p0 }
 0x248   : > { %p482_p12 = pnand %p481_p10, %p475_p5 }
 0x24a   : > { %485 = shalt.err (!%p482_p12)
}
 0x24b   : > { %378 = dma.vmem_to_hbm [thread:$0]  (%p702_p9), %s301_s6, 128, %s298_s9, [#allocation4]  }
 0x24c   : > { %507 = dma.done.wait (%p702_p9), [#allocation4], 128  }
 0x24d   : > { %509 = vsyncadd (%p702_p9), [#allocation4], 4294967168 }
 0x24e PF: > { %p14_p6 = scmp.ge.s32.totalorder %s574_s17, 4   ;;  %s703_s12 = smov %s516_s13 }
 0x24f   : > { %s704_s13 = smov %s520_s14  ;;  %s705_s14 = smov %s584_s20 }
 0x250   : > { %s706_s15 = smov %s574_s17  ;;  %16 = sbr.rel (!%p14_p6) target bundleno = 4 (0x4), region = 70 }
 0x257   :  { %313 = vsyncpa [#allocation3], 1 }
 0x258   :  { %315 = vsyncpa [#allocation3 + $0x1], 1 }
 0x259   :  { %316 = vsyncpa [#allocation4], 1 }
 0x25a   :  { %318 = vsyncpa [#allocation4 + $0x1], 1 }

// kernel: tpu_custom_call.1
= control target key start
LH: loop header
LB: loop body
LE: loop exit
PB: predicated region body
PF: predicated region fallthrough
CT: control target
= control target key end

     0   :  { %8 = vsyncpa [#allocation3], 0  ;;  %s759_s0 = inlined_call_operand.hbm [shape: f32[2,4,256], index: 0, kind: input, shape index: {}]   ;;  %s760_s1 = inlined_call_operand.vmem [shape: f32[4,4], index: 1, kind: input, shape index: {}]   ;;  %s761_s2 = inlined_call_operand.vmem [shape: f32[4,1], index: 2, kind: input, shape index: {}]   ;;  %s762_s3 = inlined_call_operand.hbm [shape: f32[2,4,256], index: 3, kind: output, shape index: {}]  }
   0x1   :  { %10 = vsyncpa [#allocation3 + $0x1], 0 }
   0x2   :  { %11 = vsyncpa [#allocation4], 0 }
   0x3   :  { %13 = vsyncpa [#allocation4 + $0x1], 0  ;;  %s588_s12 = smov 0   ;;  %s590_s13 = smov 0  }
   0x4   :  { %s592_s14 = smov 0   ;;  %s594_s15 = smov 0  }
   0x5 LB: > { %s609_s16 = sadd.s32 4294967295, %s560_s15   ;;  %s382_s17 = sadd.s32 4294967294, %s560_s15   ;;  %s560_s15 = sphi %s594_s15, %s777_s15   ;;  %s556_s14 = sphi %s592_s14, %s776_s14   ;;  %s552_s13 = sphi %s590_s13, %s775_s13   ;;  %s548_s12 = sphi %s588_s12, %s774_s12  }
   0x6   : > { %s613_s18 = sadd.s32 1, %s560_s15   ;;  %s26_s19 = sadd.s32 1, %s556_s14 }
   0x7   : > { %s23_s20 = ssub.s32 %s560_s15, %s613_s18  ;;  %p33_p0 = scmp.ne.s32.totalorder %s556_s14, %s552_s13 }
   0x8   : > { %p24_p1 = scmp.eq.s32.totalorder %s23_s20, 0  ;;  %p34_p2 = scmp.eq.s32.totalorder %s560_s15, 0 }
   0x9   : > { %p39_p3 = scmp.ne.s32.totalorder %s552_s13, %s548_s12  ;;  %p40_p4 = scmp.eq.s32.totalorder %s609_s16, 0 }
   0xa   : > { %s625_s21 = scalar_select %p24_p1, %s556_s14, %s26_s19  }
   0xb   : > { %p627_p5 = por %p34_p2, %p33_p0  ;;  %p631_p6 = por %p40_p4, %p39_p3 }
   0xc   : > { %p105_p7 = scmp.eq.s32.totalorder %s609_s16, 1  ;;  %p111_p8 = scmp.eq.s32.totalorder %s382_s17, 1 }
   0xd   : > { %p420_p10 = scmp.lt.s32.totalorder %s560_s15, 2  ;;  %s137_s26 = sand.u32 1, %s556_s14  }
   0xe   : > { %p638_p11 = por %p105_p7, %p33_p0  ;;  %p642_p12 = por %p111_p8, %p39_p3 }
   0xf   : > { %s399_s27 = sshll.u32 %s560_s15, 7  ;;  %s385_s28 = sshll.u32 %s137_s26, 3 }
  0x10   : > { %s766_s24 = scalar_select %p638_p11, 1, 0 }
  0x11   : > { %s767_s25 = scalar_select %p642_p12, 1, 0 }
  0x12   : > { %s651_s4 = scalar_lea.hbm %s759_s0, %s399_s27  ;;  %s141_s5 = scalar_lea.vmem [#allocation2], %s385_s28 }
  0x13   : > { %s149_s6 = sshll.u32 %s141_s5, 4  ;;  %p655_p13 = pnand %p420_p10, %p627_p5  ;;  %s659_s6 = int_to_ptr.vmem [resolvable:$true] %s149_s6 }
  0x14   : > { %s138_s8 = scalar_lea.sflag [#allocation3], %s137_s26  ;;  %s464_s9 = scalar_lea.hbm %s651_s4, 128 }
  0x15   : > { %p465_p2 = scmp.ne.s32.totalorder %s651_s4, %s464_s9  ;;  %p466_p3 = pneg %p655_p13 }
  0x16   : > { %s469_s17 = scalar_lea.hbm %s759_s0, 256  ;;  %p470_p5 = scmp.lt.u32.totalorder %s651_s4, %s759_s0 }
  0x17   : > { %p467_p4 = pnand %p466_p3, %p465_p2  ;;  %p471_p8 = scmp.lt.u32.totalorder %s469_s17, %s464_s9 }
  0x18   : > { %p473_p9 = scmp.lt.u32.totalorder %s464_s9, %s651_s4 }
  0x19   : > { %p468_p7 = pneg %p467_p4  ;;  %p472_p10 = por %p471_p8, %p470_p5 }
  0x1b   : > { %p474_p0 = por %p473_p9, %p472_p10 }
  0x1d   : > { %p475_p1 = pnand %p474_p0, %p468_p7 }
  0x1f   : > { %478 = shalt.err (!%p475_p1)
}
  0x20   : > { %s479_s22 = scalar_lea.vmem %s659_s6, 128  ;;  %s562_s26 = smov [#allocation2]  }
  0x21   : > { %p480_p2 = scmp.ne.s32.totalorder %s659_s6, %s479_s22  ;;  %s484_s27 = sshll.u32 %s562_s26, 4  ;;  %s485_s27 = int_to_ptr.vmem [resolvable:$false] %s484_s27 }
  0x22   : > { %s486_s28 = scalar_lea.vmem %s485_s27, 256  ;;  %p487_p11 = scmp.lt.s32.totalorder %s659_s6, %s485_s27 }
  0x23   : > { %p482_p4 = pnand %p480_p2, %p466_p3  ;;  %p488_p5 = scmp.lt.s32.totalorder %s486_s28, %s479_s22 }
  0x25   : > { %p483_p12 = pneg %p482_p4  ;;  %p489_p8 = por %p488_p5, %p487_p11 }
  0x27   : > { %p490_p9 = pnand %p489_p8, %p483_p12 }
  0x29   : > { %493 = shalt.err (!%p490_p9)
}
  0x2a   : > { %415 = dma.hbm_to_vmem [thread:$0]  (!%p655_p13), %s651_s4, 128, %s659_s6, %s138_s8  }
  0x2b   : > { %p769_p0 = scmp.lt.s32.totalorder %s560_s15, 3  ;;  %p770_p1 = scmp.ge.s32.totalorder %s560_s15, 1 }
  0x2d   : > { %p155_p3 = pnand %p770_p1, %p769_p0 }
  0x2e   : > { %s693_s29 = sand.u32 (!%p155_p3), 1, %s552_s13  }
  0x2f   : > { %158 = sbr.rel (%p155_p3) target bundleno = 592 (0x250), region = 32  ;;  %s389_s30 = sshll.u32 (!%p155_p3), %s693_s29, 3 }
  0x30   : > { %s161_s5 = scalar_lea.sflag (!%p155_p3), [#allocation3], %s693_s29  ;;  %s164_s7 = scalar_lea.vmem (!%p155_p3), [#allocation2], %s389_s30 }
  0x36   : > { %539 = dma.done.wait (%p631_p6), %s161_s5, 128  }
  0x37   : > { %541 = vsyncadd (%p631_p6), %s161_s5, 4294967168  ;;  %vm191_vm0 = vcmask 1043456   ;;  %v187_v0 = vld [vmem:[%s164_s7] sm:$0xff]  ;;  %v563_v5 = vmov 0.0   ;;  %vm564_vm1 = vmmov 0   ;;  %vm200_vm2 = vcmask 31744  }
  0x38   : > { %v189_v1 = vcombine.high %v187_v0, %v187_v0  ;;  %v192_v2 = vsel %vm191_vm0, %v187_v0, 0.0  ;;  %403 = vmatprep.subr.mxu0 %v563_v5  ;;  %405 = vmatprep.mubr.msk.f32.mxu0 %vm564_vm1, %v563_v5  ;;  %v198_v8 = vld [vmem:[%s760_s1] sm:$0xf]  ;;  %v565_v9 = vmov 0   ;;  %v566_v18 = vmov 839922192  }
  0x39   : > { %458 = vset.pattern.permute.xlu0 %v565_v9  ;;  %v199_v10 = vld [vmem:[%s761_s2] sm:$0xf]  ;;  %v288_v19 = vunpack.c.l.s4 %v566_v18  ;;  %v290_v20 = vlaneseq  ;;  %s400_s9 = sshll.u32 %s609_s16, 7  ;;  %s186_s10 = scalar_lea.vmem [#allocation5], %s389_s30 }
  0x3a   : > { %v193_v3 = vsel %vm191_vm0, %v189_v1, 0.0  ;;  %s312_s11 = sshll.u32 %s186_s10, 4  ;;  %s715_s20 = scalar_lea.hbm %s762_s3, %s400_s9  ;;  %s717_s11 = int_to_ptr.vmem [resolvable:$true] %s312_s11 }
  0x3b   : > { %v194_v4 = vadd.f32 %v193_v3, %v192_v2  ;;  %v289_v21 = vunpack.c.0.s8 %v288_v19  ;;  %v291_v22 = vshrl.u32 %v290_v20, 7  ;;  %s298_s22 = scalar_lea.sflag [#allocation4], %s693_s29  ;;  %s494_s26 = scalar_lea.vmem %s717_s11, 128 }
  0x3c   : > { %p495_p6 = scmp.ne.s32.totalorder %s717_s11, %s494_s26  ;;  %p771_p11 = scmp.ne.s32.totalorder %s766_s24, 0 }
  0x3d   : > { %195 = vadd.xlane.f32.xlu0 %v194_v4  ;;  %v292_v23 = vsub.s32 %v289_v21, %v291_v22  ;;  %s567_s16 = smov [#allocation5]  }
  0x3e   : > { %p496_p12 = pnand %p495_p6, %p771_p11  ;;  %s498_s27 = sshll.u32 %s567_s16, 4  ;;  %s499_s27 = int_to_ptr.vmem [resolvable:$false] %s498_s27 }
  0x3f   : > { %s500_s28 = scalar_lea.vmem %s499_s27, 256  ;;  %p501_p7 = scmp.lt.s32.totalorder %s717_s11, %s499_s27 }
  0x40   : > { %p497_p13 = pneg %p496_p12  ;;  %p502_p10 = scmp.lt.s32.totalorder %s500_s28, %s494_s26 }
  0x42   : > { %p503_p2 = por %p502_p10, %p501_p7 }
  0x44   : > { %p504_p4 = pnand %p503_p2, %p497_p13 }
  0xca   : > { %v196_v6 = vpop.xlane.xlu0 %195 }
  0xcb   : > { %v197_v7 = vmul.f32 0.00390625, %v196_v6 }
  0xcd   : > { %404 = vmatpush3.msk.msra.mxu0 %vm191_vm0, %v197_v7 }
  0xce   : > { %406 = vmatmul.mubr.msk.f32.vlgmr.msra.gmra.mrb[0].mxu0 %vm200_vm2, %v198_v8 }
 0x1a1   : > { %v273_v11 = vpop.f32.mrb[0].mxu0 }
 0x1a2   : > { %v274_v12 = vadd.f32 %v273_v11, %v199_v10  ;;  %v407_v13 = vpop.f32.mrb[1].mxu0 }
 0x1a4   : > { %v393_v14 = vmul.f32 -1.442695, %v274_v12 }
 0x1a6   : > { %460 = vpow2.f32 %v393_v14 }
 0x1b0   : > { %v461_v15 = vpop.eup %460 }
 0x1b1   : > { %v280_v16 = vadd.f32 1.0, %v461_v15 }
 0x1b3   : > { %462 = vrcp.f32 %v280_v16 }
 0x1bd   : > { %v463_v17 = vpop.eup %462 }
 0x1be   : > { %285 = vperm.xlu0 %458, %v463_v17  }
 0x23d   : > { %v286_v24 = vpop.permute.xlu0 %285 }
 0x23e   : > { %v293_v25 = vrot.slane %v286_v24, %v292_v23 }
 0x240   : > { %v295_v26 = vmul.f32 %v293_v25, %v187_v0 }
 0x242   : > { %296 = vst [vmem:[%s186_s10] sm:$0xff] %v295_v26 }
 0x243   : > { %507 = shalt.err (!%p504_p4)
}
 0x244   : > { %s508_s29 = scalar_lea.hbm %s715_s20, 128  ;;  %s512_s7 = scalar_lea.hbm %s762_s3, 256 }
 0x245   : > { %p509_p5 = scmp.ne.s32.totalorder %s715_s20, %s508_s29  ;;  %p513_p0 = scmp.lt.u32.totalorder %s715_s20, %s762_s3 }
 0x246   : > { %p514_p1 = scmp.lt.u32.totalorder %s512_s7, %s508_s29  ;;  %p516_p6 = scmp.lt.u32.totalorder %s508_s29, %s715_s20 }
 0x247   : > { %p510_p8 = pnand %p509_p5, %p771_p11 }
 0x248   : > { %p515_p3 = por %p514_p1, %p513_p0 }
 0x249   : > { %p511_p9 = pneg %p510_p8 }
 0x24a   : > { %p517_p12 = por %p516_p6, %p515_p3 }
 0x24c   : > { %p518_p13 = pnand %p517_p12, %p511_p9 }
 0x24e   : > { %521 = shalt.err (!%p518_p13)
}
 0x24f   : > { %410 = dma.vmem_to_hbm [thread:$0]  (%p771_p11), %s717_s11, 128, %s715_s20, %s298_s22  }
 0x250 PF: > { %s324_s23 = sand.u32 1, %s548_s12   ;;  %p772_p7 = scmp.ne.s32.totalorder %s767_s25, 0 }
 0x251   : > { %p773_p10 = scmp.ge.s32.totalorder %s560_s15, 2  ;;  %s325_s8 = scalar_lea.sflag [#allocation4], %s324_s23 }
 0x253   : > { %p417_p2 = pnand %p773_p10, %p772_p7 }
 0x255   : > { %543 = dma.done.wait (!%p417_p2), %s325_s8, 128  }
 0x256   : > { %545 = vsyncadd (!%p417_p2), %s325_s8, 4294967168  ;;  %p16_p4 = scmp.ge.s32.totalorder %s613_s18, 4   ;;  %s774_s12 = smov %s552_s13 }
 0x257   : > { %s775_s13 = smov %s556_s14  ;;  %s776_s14 = smov %s625_s21 }
 0x258   : > { %s777_s15 = smov %s613_s18  ;;  %18 = sbr.rel (!%p16_p4) target bundleno = 5 (0x5), region = 77 }
 0x25f   :  { %330 = vsyncpa [#allocation3], 1 }
 0x260   :  { %332 = vsyncpa [#allocation3 + $0x1], 1 }
 0x261   :  { %333 = vsyncpa [#allocation4], 1 }
 0x262   :  { %335 = vsyncpa [#allocation4 + $0x1], 1 }

</bundles_post_ra>
